<compile_context>
chip_gen: v7x
topology: tpu7x:2x2x1
jax: 0.10.0
libtpu: 0.0.40
codegen_flags: <defaults>
</compile_context>

<pallas_src>
import functools
import math

import jax
import jax.numpy as jnp
from jax.experimental import pallas as pl
from jax.experimental.pallas import tpu as pltpu


CONV_CONFIGS = [
    # (cin, cout, kernel, stride, padding, groups)
    (1, 32, 15, 1, 7, 1),
    (32, 128, 41, 4, 20, 4),
    (128, 512, 41, 4, 20, 16),
    (512, 1024, 41, 4, 20, 64),
    (1024, 1024, 5, 1, 2, 1),
    (1024, 1, 3, 1, 1, 1),
]

LRELU_SLOPE = 0.1


# --------------------------------- VMEM planning ----------------------------------- #
@functools.lru_cache(maxsize=None)
def _vmem_limit_bytes():
    cap = 64 * 1024 * 1024          # conservative default: v7x per-TensorCore VMEM
    try:
        info = pltpu.get_tpu_info()
        cap = int(getattr(info, "vmem_capacity_bytes", cap) or cap)
    except Exception:
        pass
    # 3/4 of physical VMEM: ~96 MiB on 128 MiB parts (v5e/v6e), 48 MiB on v7x.
    return max(32 * 1024 * 1024, min((cap * 3) // 4, 112 * 1024 * 1024))


def _plan_tiles(Lout, G, sc, cout_g, KCp, n_out):
    """Pick the output-length tile (lane dim). Returns (lt, Lout_pad, n_lt, use_halo)."""
    limit = _vmem_limit_bytes()
    budget = limit - max(8 * 1024 * 1024, limit // 4)   # headroom for Mosaic internals

    def footprint(lt, halo):
        patch = G * KCp * lt * 2                      # bf16 im2col scratch
        x_main = 2 * G * sc * lt * 2                  # double-buffered bf16 input tile
        x_halo = (2 * G * sc * 128 * 2) if halo else 0
        outs = 2 * n_out * G * cout_g * lt * 4        # double-buffered f32 outputs
        wgt = 2 * G * cout_g * KCp * 2                # weights (constant map, 2 buffers)
        bias = 2 * G * cout_g * 4
        return patch + x_main + x_halo + outs + wgt + bias

    # Case A: a single block over the full Lout (no halo, no padding / cropping).
    if footprint(Lout, False) <= budget:
        return Lout, Lout, 1, False

    # Case B: tile Lout.  Pad Lout up to a multiple of lt; crop the tail in the wrapper.
    max_cand = ((Lout + 127) // 128) * 128
    lt = 128
    for cand in (8192, 4096, 2048, 1024, 512, 256, 128):
        if cand <= max_cand and footprint(cand, True) <= budget:
            lt = cand
            break
    Lout_pad = ((Lout + lt - 1) // lt) * lt
    return lt, Lout_pad, Lout_pad // lt, True


# ------------------------------ Conv1d (+LeakyReLU) kernel ------------------------- #
def _conv1d_kernel(*refs, n_q, sc, lt, use_halo, fuse_act, slope):
    if use_halo:
        xm_ref, xh_ref, w_ref, b_ref = refs[:4]
        rest = refs[4:]
    else:
        xm_ref, w_ref, b_ref = refs[:3]
        xh_ref = None
        rest = refs[3:]
    if fuse_act:
        o_ref, oa_ref, p_ref = rest
    else:
        o_ref, p_ref = rest
        oa_ref = None

    # ---- im2col: one slab copy per tap offset q (all stride phases at once) -------- #
    for q in range(n_q):
        rows = slice(q * sc, (q + 1) * sc)
        if (not use_halo) or q == 0:
            p_ref[:, rows, :] = xm_ref[0, :, :, q:q + lt]
        else:
            # tap window spans the main tile and the 128-lane halo tile
            p_ref[:, rows, 0:lt - q] = xm_ref[0, :, :, q:lt]
            p_ref[:, rows, lt - q:lt] = xh_ref[0, :, :, 0:q]

    # ---- per-(group / cout-chunk) deep MXU matmul + bias + LeakyReLU + store -------- #
    G_blk = w_ref.shape[0]
    cot = w_ref.shape[1]

    def mm_chunk(g, co_slc):
        w = w_ref[g, co_slc, :]                              # (ch, KCp) bf16
        acc = jnp.dot(w, p_ref[g], preferred_element_type=jnp.float32)
        acc = acc + b_ref[g, co_slc, :]
        o_ref[0, g, co_slc, :] = acc
        if fuse_act:
            oa_ref[0, g, co_slc, :] = jnp.where(acc >= 0.0, acc, slope * acc)

    if G_blk == 1:
        # wide-output layers: static chunks of <=256 rows bound the live accumulator
        ch = cot if (cot <= 256 or cot % 256 != 0) else 256
        for co in range(0, cot, ch):
            mm_chunk(0, slice(co, co + ch))
    else:
        # grouped layers: fori_loop keeps the live set at one (cout_g, lt) accumulator
        def body(g, carry):
            mm_chunk(g, slice(None))
            return carry
        jax.lax.fori_loop(0, G_blk, body, 0)


def conv1d_pallas(x, w_packed, b_packed, *, kernel_size, stride, padding, groups,
                  fuse_act, slope=LRELU_SLOPE, _tile_override=None):
    """PyTorch-semantics Conv1d, optionally fused with LeakyReLU.

    x:        (B, Cin, L) float32 (NCL, as PyTorch)
    w_packed: (G, Cout_g, ceil(K/s)*s*Cin_g) bfloat16   (see pack_conv_params)
    b_packed: (G, Cout_g, 1) float32
    Returns (B, Cout, Lout) [and the LeakyReLU output when fuse_act=True].
    """
    B, Cin, L = x.shape
    K, s, G = kernel_size, stride, groups
    cin_g = Cin // G
    sc = s * cin_g
    Gw, cout_g, KCp = w_packed.shape
    n_q = -(-K // s)
    assert Gw == G and KCp == n_q * sc
    Cout = G * cout_g

    Lout = (L + 2 * padding - K) // s + 1
    qmax = n_q - 1
    assert Lout >= 1 and qmax < 128

    n_out = 2 if fuse_act else 1
    if _tile_override is not None:                 # test hook: force the tiled/halo path
        lt = int(_tile_override)
        assert lt % 128 == 0
        Lout_pad = -(-Lout // lt) * lt
        n_lt, use_halo = Lout_pad // lt, True
    else:
        lt, Lout_pad, n_lt, use_halo = _plan_tiles(Lout, G, sc, cout_g, KCp, n_out)

    # zero-pad so every block (incl. the 128-lane halo of the last tile) is in bounds
    Lq = (Lout_pad + 128) if use_halo else (Lout + qmax)
    right = s * Lq - padding - L
    assert right >= 0

    # pad + phase-decompose the length axis, in bf16 (one fused XLA pass):
    #   (B, Cin, s*Lq) -> (B, G, s*cin_g, Lq)  with row r*cin_g + c = (phase r, channel c)
    xp = jnp.pad(x.astype(jnp.bfloat16), ((0, 0), (0, 0), (padding, right)))
    xg = (xp.reshape(B, G, cin_g, Lq, s)
            .transpose(0, 1, 4, 2, 3)
            .reshape(B, G, sc, Lq))

    # megacore: guarantee >= 2 parallel grid steps (v7x has 2 TensorCores per chip)
    split_g = split_co = False
    if B * n_lt < 2:
        if G % 2 == 0:
            split_g = True
        elif cout_g % 32 == 0:
            split_co = True
    n_split = 2 if (split_g or split_co) else 1
    gt = G // 2 if split_g else G
    cot = cout_g // 2 if split_co else cout_g
    g_of = (lambda h: h) if split_g else (lambda h: 0)
    c_of = (lambda h: h) if split_co else (lambda h: 0)

    if use_halo:
        hb = lt // 128
        in_specs = [
            pl.BlockSpec((1, gt, sc, lt), lambda b, h, l: (b, g_of(h), 0, l)),
            pl.BlockSpec((1, gt, sc, 128), lambda b, h, l: (b, g_of(h), 0, (l + 1) * hb)),
        ]
        inputs = (xg, xg)
    else:
        in_specs = [pl.BlockSpec((1, gt, sc, Lq), lambda b, h, l: (b, g_of(h), 0, 0))]
        inputs = (xg,)
    in_specs += [
        pl.BlockSpec((gt, cot, KCp), lambda b, h, l: (g_of(h), c_of(h), 0)),
        pl.BlockSpec((gt, cot, 1), lambda b, h, l: (g_of(h), c_of(h), 0)),
    ]
    inputs = inputs + (w_packed, b_packed)

    out_struct = jax.ShapeDtypeStruct((B, G, cout_g, Lout_pad), jnp.float32)
    out_spec = pl.BlockSpec((1, gt, cot, lt), lambda b, h, l: (b, g_of(h), c_of(h), l))
    out_shape = (out_struct, out_struct) if fuse_act else out_struct
    out_specs = (out_spec, out_spec) if fuse_act else out_spec

    kernel = functools.partial(_conv1d_kernel, n_q=n_q, sc=sc, lt=lt,
                               use_halo=use_halo, fuse_act=fuse_act, slope=slope)

    res = pl.pallas_call(
        kernel,
        out_shape=out_shape,
        grid=(B, n_split, n_lt),
        in_specs=in_specs,
        out_specs=out_specs,
        scratch_shapes=[pltpu.VMEM((gt, KCp, lt), jnp.bfloat16)],
        compiler_params=pltpu.CompilerParams(
            dimension_semantics=("parallel", "parallel", "parallel"),
            vmem_limit_bytes=_vmem_limit_bytes(),
        ),
    )(*inputs)

    def finish(y):
        y = y.reshape(B, Cout, Lout_pad)
        return y[:, :, :Lout] if Lout_pad != Lout else y

    if fuse_act:
        y, ya = res
        return finish(y), finish(ya)
    return finish(res)


# --------------------------------- AvgPool1d kernel -------------------------------- #
def _avgpool_kernel(x_ref, o_ref):
    # x_ref: (1, 2, Lout+1) with row 0 = xpad[even], row 1 = xpad[odd]
    Lout = o_ref.shape[-1]
    w = x_ref[0, :, 0:Lout] + x_ref[0, :, 1:Lout + 1]          # (2, Lout)
    o_ref[0, :, :] = 0.25 * jnp.sum(w, axis=0, keepdims=True)


def avg_pool1d_pallas(x):
    """AvgPool1d(kernel_size=4, stride=2, padding=2, count_include_pad=True)."""
    B, C, L = x.shape
    Lout = L // 2 + 1
    right = 2 * (Lout + 1) - 2 - L
    xp = jnp.pad(x.reshape(B * C, L), ((0, 0), (2, right)))
    xe = xp.reshape(B * C, Lout + 1, 2).transpose(0, 2, 1)      # (B*C, 2, Lout+1)
    out = pl.pallas_call(
        _avgpool_kernel,
        out_shape=jax.ShapeDtypeStruct((B * C, 1, Lout), jnp.float32),
        grid=(B * C,),
        in_specs=[pl.BlockSpec((1, 2, Lout + 1), lambda b: (b, 0, 0))],
        out_specs=pl.BlockSpec((1, 1, Lout), lambda b: (b, 0, 0)),
        compiler_params=pltpu.CompilerParams(
            dimension_semantics=("parallel",),
            vmem_limit_bytes=_vmem_limit_bytes(),
        ),
    )(xe)
    return out.reshape(B, C, Lout)


# ------------------------------------ parameters ----------------------------------- #
def pack_conv_params(w, b, groups, stride):
    """(Cout, Cin_g, K) f32, (Cout,) f32 -> kernel layout (done once at init):
       w: (G, Cout_g, ceil(K/s)*s*Cin_g) bf16, taps zero-padded to a multiple of the
          stride and laid out tap-major / in-channel-minor (row t*cin_g + c), matching
          the per-q-slab im2col row order q*s*cin_g + r*cin_g + c.
       b: (G, Cout_g, 1) f32
    """
    Cout, cin_g, K = w.shape
    G, s = groups, stride
    cout_g = Cout // G
    Kp = (-(-K // s)) * s
    wpad = jnp.pad(w, ((0, 0), (0, 0), (0, Kp - K)))
    wp = (wpad.reshape(G, cout_g, cin_g, Kp)
              .transpose(0, 1, 3, 2)
              .reshape(G, cout_g, Kp * cin_g)
              .astype(jnp.bfloat16))
    bp = b.reshape(G, cout_g, 1).astype(jnp.float32)
    return wp, bp


def init_msd_params(key):
    """3 sub-discriminators x 6 convs, PyTorch-style uniform(+-1/sqrt(fan_in)) init."""
    params = []
    for d in range(3):
        sub = []
        for li, (cin, cout, k, s, p, g) in enumerate(CONV_CONFIGS):
            cin_g = cin // g
            bound = 1.0 / math.sqrt(cin_g * k)
            kw = jax.random.fold_in(key, d * 100 + 2 * li)
            kb = jax.random.fold_in(key, d * 100 + 2 * li + 1)
            w = jax.random.uniform(kw, (cout, cin_g, k), jnp.float32, -bound, bound)
            b = jax.random.uniform(kb, (cout,), jnp.float32, -bound, bound)
            sub.append((w, b))
        params.append(sub)
    return params


def pack_msd_params(raw_params):
    return [[pack_conv_params(w, b, groups=cfg[5], stride=cfg[3])
             for cfg, (w, b) in zip(CONV_CONFIGS, sub)]
            for sub in raw_params]


# ------------------------------------ MSD forward ----------------------------------- #
def sub_discriminator_forward(x, sub_packed):
    feats = []
    n = len(CONV_CONFIGS)
    for i, ((cin, cout, k, s, p, g), (wp, bp)) in enumerate(zip(CONV_CONFIGS, sub_packed)):
        if i < n - 1:
            y, ya = conv1d_pallas(x, wp, bp, kernel_size=k, stride=s, padding=p,
                                  groups=g, fuse_act=True)
            feats.append(y)      # Conv1d layer output
            feats.append(ya)     # fused LeakyReLU layer output
            x = ya
        else:
            y = conv1d_pallas(x, wp, bp, kernel_size=k, stride=s, padding=p,
                              groups=g, fuse_act=False)
            feats.append(y)
            x = y
    return x.reshape(x.shape[0], -1), feats


def msd_forward(x, packed_params):
    # The PyTorch module applies each AvgPool1d to the *original* x, so both pooling
    # branches see the identical input -> compute the pooled signal once (VPU kernel).
    pooled = avg_pool1d_pallas(x)
    outputs, features = [], []
    for i in range(3):
        px = x if i == 0 else pooled
        out, feats = sub_discriminator_forward(px, packed_params[i])
        outputs.append(out)
        features.append(feats)
    return outputs, features


# -------------------------------------- reference ----------------------------------- #
def conv1d_ref(x, w, b, *, stride, padding, groups):
    """XLA reference with the same bf16-operand / f32-accumulation numerics."""
    y = jax.lax.conv_general_dilated(
        x.astype(jnp.bfloat16), w.astype(jnp.bfloat16),
        window_strides=(stride,), padding=[(padding, padding)],
        feature_group_count=groups, dimension_numbers=("NCH", "OIH", "NCH"),
        preferred_element_type=jnp.float32)
    return y + b[None, :, None].astype(jnp.float32)


def avg_pool1d_ref(x):
    B, C, L = x.shape
    Lout = L // 2 + 1
    xp = jnp.pad(x, ((0, 0), (0, 0), (2, 2 * Lout - L)))
    return 0.25 * (xp[..., 0:2 * Lout:2] + xp[..., 1:2 * Lout + 1:2]
                   + xp[..., 2:2 * Lout + 2:2] + xp[..., 3:2 * Lout + 3:2])


def msd_forward_ref(x, raw_params):
    def sub(x, sp):
        feats = []
        n = len(CONV_CONFIGS)
        for i, ((cin, cout, k, s, p, g), (w, b)) in enumerate(zip(CONV_CONFIGS, sp)):
            x = conv1d_ref(x, w, b, stride=s, padding=p, groups=g)
            feats.append(x)
            if i < n - 1:
                x = jnp.where(x >= 0, x, LRELU_SLOPE * x)
                feats.append(x)
        return x.reshape(x.shape[0], -1), feats

    pooled = avg_pool1d_ref(x)
    outs, featss = [], []
    for i in range(3):
        px = x if i == 0 else pooled
        o, f = sub(px, raw_params[i])
        outs.append(o)
        featss.append(f)
    return outs, featss


def _rel_err(a, b):
    a = jnp.asarray(a, jnp.float32)
    b = jnp.asarray(b, jnp.float32)
    return float(jnp.linalg.norm(a - b) / (jnp.linalg.norm(b) + 1e-8))


if __name__ == "__main__":
    key = jax.random.PRNGKey(0)

    # --- unit test 1: grouped, strided conv vs XLA reference --------------------------- #
    xt = jax.random.normal(jax.random.fold_in(key, 1), (2, 8, 37), jnp.float32)
    wt = jax.random.normal(jax.random.fold_in(key, 2), (16, 2, 7), jnp.float32) * 0.2
    bt = jax.random.normal(jax.random.fold_in(key, 3), (16,), jnp.float32) * 0.1
    wp, bp = pack_conv_params(wt, bt, groups=4, stride=3)
    y_pal = conv1d_pallas(xt, wp, bp, kernel_size=7, stride=3, padding=3, groups=4,
                          fuse_act=False)
    y_ref = conv1d_ref(xt, wt, bt, stride=3, padding=3, groups=4)
    assert _rel_err(y_pal, y_ref) < 2e-2, "grouped conv mismatch"

    # --- unit test 2: forced Lout tiling (halo + pad/crop) + fused LeakyReLU ----------- #
    xt2 = jax.random.normal(jax.random.fold_in(key, 4), (2, 8, 1030), jnp.float32)
    y2, ya2 = conv1d_pallas(xt2, wp, bp, kernel_size=7, stride=3, padding=3, groups=4,
                            fuse_act=True, _tile_override=128)
    y2_ref = conv1d_ref(xt2, wt, bt, stride=3, padding=3, groups=4)
    ya2_ref = jnp.where(y2_ref >= 0, y2_ref, LRELU_SLOPE * y2_ref)
    assert _rel_err(y2, y2_ref) < 2e-2, "tiled conv mismatch"
    assert _rel_err(ya2, ya2_ref) < 2e-2, "fused LeakyReLU mismatch"

    # --- unit test 3: batch-1 megacore split over groups ------------------------------- #
    xt3 = xt[:1]
    y3 = conv1d_pallas(xt3, wp, bp, kernel_size=7, stride=3, padding=3, groups=4,
                       fuse_act=False)
    y3_ref = conv1d_ref(xt3, wt, bt, stride=3, padding=3, groups=4)
    assert _rel_err(y3, y3_ref) < 2e-2, "group-split conv mismatch"

    # --- unit test 4: batch-1 megacore split over output channels (G == 1) ------------- #
    xt4 = jax.random.normal(jax.random.fold_in(key, 5), (1, 16, 64), jnp.float32)
    wt4 = jax.random.normal(jax.random.fold_in(key, 6), (32, 16, 5), jnp.float32) * 0.1
    bt4 = jax.random.normal(jax.random.fold_in(key, 7), (32,), jnp.float32) * 0.1
    wp4, bp4 = pack_conv_params(wt4, bt4, groups=1, stride=1)
    y4, ya4 = conv1d_pallas(xt4, wp4, bp4, kernel_size=5, stride=1, padding=2, groups=1,
                            fuse_act=True)
    y4_ref = conv1d_ref(xt4, wt4, bt4, stride=1, padding=2, groups=1)
    ya4_ref = jnp.where(y4_ref >= 0, y4_ref, LRELU_SLOPE * y4_ref)
    assert _rel_err(y4, y4_ref) < 2e-2, "cout-split conv mismatch"
    assert _rel_err(ya4, ya4_ref) < 2e-2, "cout-split LeakyReLU mismatch"

    # --- unit test 5: AvgPool1d VPU kernel --------------------------------------------- #
    xt5 = jax.random.normal(jax.random.fold_in(key, 8), (2, 1, 256), jnp.float32)
    assert _rel_err(avg_pool1d_pallas(xt5), avg_pool1d_ref(xt5)) < 1e-5, "avgpool mismatch"

    # --- full MSD forward --------------------------------------------------------------- #
    raw_params = init_msd_params(jax.random.PRNGKey(42))
    packed_params = pack_msd_params(raw_params)
    x = jax.random.normal(jax.random.PRNGKey(0), (2, 1, 256), jnp.float32)

    outputs, features = jax.jit(msd_forward)(x, packed_params)
    jax.block_until_ready((outputs, features))

    # structural + numerical check against the XLA reference
    ref_outputs, ref_features = msd_forward_ref(x, raw_params)
    assert len(outputs) == 3 and len(features) == 3
    for o, ro in zip(outputs, ref_outputs):
        assert o.shape == ro.shape and _rel_err(o, ro) < 3e-2
    for fs, rfs in zip(features, ref_features):
        assert len(fs) == len(rfs) == 2 * len(CONV_CONFIGS) - 1
        for f, rf in zip(fs, rfs):
            assert f.shape == rf.shape and _rel_err(f, rf) < 3e-2

    print("KERNEL_OK")
</pallas_src>

<mosaic_0001>
module attributes {stable_mosaic.version = 11 : i64} {
  func.func @_conv1d_kernel(%arg0: i32, %arg1: i32, %arg2: i32, %arg3: memref<1x4x6x15xbf16, #tpu.memory_space<vmem>>, %arg4: memref<4x4x18xbf16, #tpu.memory_space<vmem>>, %arg5: memref<4x4x1xf32, #tpu.memory_space<vmem>>, %arg6: memref<1x4x4x13xf32, #tpu.memory_space<vmem>>, %arg7: memref<4x18x13xbf16, #tpu.memory_space<vmem>>) attributes {dimension_semantics = [#tpu.dimension_semantics<parallel>, #tpu.dimension_semantics<parallel>, #tpu.dimension_semantics<parallel>], iteration_bounds = array<i64: 2, 1, 1>, scalar_prefetch = 0 : i64, scratch_operands = 1 : i64, tpu.core_type = #tpu.core_type<tc>, window_params = [{transform_indices = @transform_0, window_bounds = array<i64: 1, 4, 6, 15>}, {pipeline_mode = #tpu.pipeline_mode<synchronous>, transform_indices = @transform_1, window_bounds = array<i64: 4, 4, 18>}, {pipeline_mode = #tpu.pipeline_mode<synchronous>, transform_indices = @transform_2, window_bounds = array<i64: 4, 4, 1>}, {transform_indices = @transform_3, window_bounds = array<i64: 1, 4, 4, 13>}]} {
    %c0 = arith.constant 0 : index
    %c0_0 = arith.constant 0 : index
    %c0_1 = arith.constant 0 : index
    %c0_2 = arith.constant 0 : index
    %0 = vector.load %arg3[%c0, %c0_0, %c0_1, %c0_2] : memref<1x4x6x15xbf16, #tpu.memory_space<vmem>>, vector<1x4x6x13xbf16>
    %1 = vector.shape_cast %0 : vector<1x4x6x13xbf16> to vector<4x6x13xbf16>
    %c0_3 = arith.constant 0 : index
    %c0_4 = arith.constant 0 : index
    %c0_5 = arith.constant 0 : index
    %2 = vector.load %arg7[%c0_3, %c0_4, %c0_5] : memref<4x18x13xbf16, #tpu.memory_space<vmem>>, vector<4x6x13xbf16>
    tpu.vector_store %arg7[%c0_3, %c0_4, %c0_5], %1 {strides = array<i32>} : memref<4x18x13xbf16, #tpu.memory_space<vmem>>, vector<4x6x13xbf16>,
    %c0_6 = arith.constant 0 : index
    %c0_7 = arith.constant 0 : index
    %c0_8 = arith.constant 0 : index
    %c1 = arith.constant 1 : index
    %3 = vector.load %arg3[%c0_6, %c0_7, %c0_8, %c1] : memref<1x4x6x15xbf16, #tpu.memory_space<vmem>>, vector<1x4x6x13xbf16>
    %4 = vector.shape_cast %3 : vector<1x4x6x13xbf16> to vector<4x6x13xbf16>
    %c0_9 = arith.constant 0 : index
    %c6 = arith.constant 6 : index
    %c0_10 = arith.constant 0 : index
    %5 = vector.load %arg7[%c0_9, %c6, %c0_10] : memref<4x18x13xbf16, #tpu.memory_space<vmem>>, vector<4x6x13xbf16>
    tpu.vector_store %arg7[%c0_9, %c6, %c0_10], %4 {strides = array<i32>} : memref<4x18x13xbf16, #tpu.memory_space<vmem>>, vector<4x6x13xbf16>,
    %c0_11 = arith.constant 0 : index
    %c0_12 = arith.constant 0 : index
    %c0_13 = arith.constant 0 : index
    %c2 = arith.constant 2 : index
    %6 = vector.load %arg3[%c0_11, %c0_12, %c0_13, %c2] : memref<1x4x6x15xbf16, #tpu.memory_space<vmem>>, vector<1x4x6x13xbf16>
    %7 = vector.shape_cast %6 : vector<1x4x6x13xbf16> to vector<4x6x13xbf16>
    %c0_14 = arith.constant 0 : index
    %c12 = arith.constant 12 : index
    %c0_15 = arith.constant 0 : index
    %8 = vector.load %arg7[%c0_14, %c12, %c0_15] : memref<4x18x13xbf16, #tpu.memory_space<vmem>>, vector<4x6x13xbf16>
    tpu.vector_store %arg7[%c0_14, %c12, %c0_15], %7 {strides = array<i32>} : memref<4x18x13xbf16, #tpu.memory_space<vmem>>, vector<4x6x13xbf16>,
    %c0_i32 = arith.constant 0 : i32
    %c4_i32 = arith.constant 4 : i32
    %9 = arith.addi %c0_i32, %c4_i32 : i32
    %c1_i32 = arith.constant 1 : i32
    scf.for %arg8 = %c0_i32 to %9 step %c1_i32  : i32 {
      %10 = arith.index_cast %arg8 : i32 to index
      %c0_17 = arith.constant 0 : index
      %c0_18 = arith.constant 0 : index
      %11 = vector.load %arg4[%10, %c0_17, %c0_18] : memref<4x4x18xbf16, #tpu.memory_space<vmem>>, vector<1x4x18xbf16>
      %12 = vector.shape_cast %11 : vector<1x4x18xbf16> to vector<4x18xbf16>
      %13 = arith.index_cast %arg8 : i32 to index
      %c0_19 = arith.constant 0 : index
      %c0_20 = arith.constant 0 : index
      %14 = vector.load %arg7[%13, %c0_19, %c0_20] : memref<4x18x13xbf16, #tpu.memory_space<vmem>>, vector<1x18x13xbf16>
      %15 = vector.shape_cast %14 : vector<1x18x13xbf16> to vector<18x13xbf16>
      %cst = arith.constant dense<0.000000e+00> : vector<4x13xf32>
      %16 = tpu.matmul %12, %15, %cst {dimension_numbers = #tpu.dot_dimension_numbers<[1], [0], [0], [1], [0, 0, 1, 1], [], []>} : vector<4x18xbf16>, vector<18x13xbf16>, vector<4x13xf32> -> vector<4x13xf32>
      %17 = arith.index_cast %arg8 : i32 to index
      %c0_21 = arith.constant 0 : index
      %c0_22 = arith.constant 0 : index
      %18 = vector.load %arg5[%17, %c0_21, %c0_22] : memref<4x4x1xf32, #tpu.memory_space<vmem>>, vector<1x4x1xf32>
      %19 = vector.shape_cast %18 : vector<1x4x1xf32> to vector<4x1xf32>
      %20 = vector.broadcast %19 : vector<4x1xf32> to vector<4x13xf32>
      %21 = arith.addf %16, %20 : vector<4x13xf32>
      %c0_23 = arith.constant 0 : index
      %22 = arith.index_cast %arg8 : i32 to index
      %c0_24 = arith.constant 0 : index
      %c0_25 = arith.constant 0 : index
      %23 = vector.load %arg6[%c0_23, %22, %c0_24, %c0_25] : memref<1x4x4x13xf32, #tpu.memory_space<vmem>>, vector<1x1x4x13xf32>
      %24 = vector.shape_cast %23 : vector<1x1x4x13xf32> to vector<4x13xf32>
      %25 = vector.shape_cast %21 : vector<4x13xf32> to vector<1x1x4x13xf32>
      tpu.vector_store %arg6[%c0_23, %22, %c0_24, %c0_25], %25 {strides = array<i32>} : memref<1x4x4x13xf32, #tpu.memory_space<vmem>>, vector<1x1x4x13xf32>,
    }
    %c4_i32_16 = arith.constant 4 : i32
    return
  }
  func.func @transform_0(%arg0: i32, %arg1: i32, %arg2: i32) -> (i32, i32, i32, i32) {
    %c0_i32 = arith.constant 0 : i32
    %c0_i32_0 = arith.constant 0 : i32
    %c0_i32_1 = arith.constant 0 : i32
    %c0_i32_2 = arith.constant 0 : i32
    return %arg0, %c0_i32, %c0_i32_0, %c0_i32_1 : i32, i32, i32, i32
  }
  func.func @transform_1(%arg0: i32, %arg1: i32, %arg2: i32) -> (i32, i32, i32) {
    %c0_i32 = arith.constant 0 : i32
    %c0_i32_0 = arith.constant 0 : i32
    %c0_i32_1 = arith.constant 0 : i32
    %c0_i32_2 = arith.constant 0 : i32
    return %c0_i32, %c0_i32_0, %c0_i32_1 : i32, i32, i32
  }
  func.func @transform_2(%arg0: i32, %arg1: i32, %arg2: i32) -> (i32, i32, i32) {
    %c0_i32 = arith.constant 0 : i32
    %c0_i32_0 = arith.constant 0 : i32
    %c0_i32_1 = arith.constant 0 : i32
    %c0_i32_2 = arith.constant 0 : i32
    return %c0_i32, %c0_i32_0, %c0_i32_1 : i32, i32, i32
  }
  func.func @transform_3(%arg0: i32, %arg1: i32, %arg2: i32) -> (i32, i32, i32, i32) {
    %c0_i32 = arith.constant 0 : i32
    %c0_i32_0 = arith.constant 0 : i32
    %c0_i32_1 = arith.constant 0 : i32
    return %arg0, %c0_i32, %c0_i32_0, %arg2 : i32, i32, i32, i32
  }
}

</mosaic_0001>

<bundles_post_ra>
// kernel: tpu_custom_call.1
= control target key start
LH: loop header
LB: loop body
LE: loop exit
PB: predicated region body
PF: predicated region fallthrough
CT: control target
= control target key end

     0   :  { %8 = vsyncpa [#allocation4], 0  ;;  %s870_s0 = inlined_call_operand.vmem [shape: bf16[2,4,6,15], index: 0, kind: input, shape index: {}]   ;;  %s871_s1 = inlined_call_operand.vmem [shape: bf16[4,4,18], index: 1, kind: input, shape index: {}]   ;;  %s872_s2 = inlined_call_operand.vmem [shape: f32[4,4,1], index: 2, kind: input, shape index: {}]   ;;  %s873_s3 = inlined_call_operand.hbm [shape: f32[2,4,4,13], index: 3, kind: output, shape index: {}]  }
   0x1   :  { %10 = vsyncpa [#allocation4 + $0x1], 0  ;;  %s705_s12 = smov 0   ;;  %s707_s13 = smov 0  }
   0x2   :  { %s709_s14 = smov 0   ;;  %s711_s15 = smov 0  }
   0x3   :  { %s713_s16 = smov 0   ;;  %s715_s17 = smov 0  }
   0x4 LB: > { %s483_s18 = sadd.s32 4294967295, %s671_s17   ;;  %s484_s19 = sadd.s32 4294967294, %s671_s17   ;;  %s671_s17 = sphi %s715_s17, %s16_s17   ;;  %s667_s16 = sphi %s713_s16, %s880_s16   ;;  %s663_s15 = sphi %s711_s15, %s879_s15   ;;  %s659_s14 = sphi %s709_s14, %s878_s14   ;;  %s655_s13 = sphi %s707_s13, %s877_s13   ;;  %s651_s12 = sphi %s705_s12, %s876_s12  }
   0x5   : > { %s35_s20 = sadd.s32 1, %s667_s16  ;;  %s112_s21 = sadd.s32 1, %s659_s14 }
   0x6   : > { %p37_p0 = scmp.ge.s32.totalorder %s35_s20, 2  ;;  %p122_p1 = scmp.ne.s32.totalorder %s659_s14, %s655_s13 }
   0x7   : > { %p123_p2 = scmp.eq.s32.totalorder %s483_s18, 1  ;;  %p128_p3 = scmp.ne.s32.totalorder %s655_s13, %s651_s12 }
   0x8   : > { %s882_s20 = smov (%p37_p0, %s35_s20), 0  ;;  %p129_p5 = scmp.eq.s32.totalorder %s484_s19, 1 }
   0x9   : > { %p745_p4 = por %p123_p2, %p122_p1  ;;  %s107_s23 = ssub.s32 %s667_s16, %s882_s20 }
   0xa   : > { %p487_p6 = scmp.ge.s32.totalorder %s671_s17, 1  ;;  %p110_p7 = scmp.eq.s32.totalorder %s107_s23, 0 }
   0xb   : > { %p752_p8 = por %p129_p5, %p128_p3  ;;  %p161_p9 = scmp.lt.s32.totalorder %s671_s17, 3 }
   0xc   : > { %s758_s25 = scalar_select %p110_p7, %s659_s14, %s112_s21  }
   0xd   : > { %p162_p10 = pnand %p487_p6, %p161_p9 }
   0xe   : > { %p185_p11 = scmp.lt.s32.totalorder (!%p162_p10), %s663_s15, 1  ;;  %vm195_vm0 = vcmask (!%p162_p10), 100352   ;;  %s677_s4 = smov (!%p162_p10), 127   ;;  %vm240_vm1 = vcmask (!%p162_p10), 101379   ;;  %vm242_vm2 = vcmask (!%p162_p10), 99328   ;;  %vm292_vm3 = vcmask (!%p162_p10), 98304  }
   0xf   : > { %165 = sbr.rel (%p162_p10) target bundleno = 419 (0x1a3), region = 32  ;;  %s182_s5 = sand.u32 (!%p162_p10), 1, %s655_s13   ;;  %vm290_vm4 = vcmask (!%p162_p10), 101378  }
  0x10   : > { %s678_s6 = smov (!%p162_p10), 126   ;;  %s781_s7 = sshll.u32 (!%p162_p10), %s182_s5, 4 }
  0x11   : > { %s184_s8 = scalar_lea.vmem (!%p162_p10), [#allocation3], %s781_s7  ;;  %s793_s9 = smov (!%p162_p10), 0  }
  0x16   : > { %s186_s26 = scalar_select %p185_p11, %s663_s15, 1 }
  0x18   : > { %s502_s27 = sshll.u32 %s186_s26, 4 }
  0x19   : > { %s765_s30 = scalar_lea.vmem %s870_s0, %s502_s27 }
  0x1a   : > { %v201_v0 = vld [vmem:[%s765_s30 + $0x4] sm:$0x7]  ;;  %v191_v1 = vld [vmem:[%s765_s30] sm:$0x7]  ;;  %v193_v4 = vld [vmem:[%s765_s30 + $0x8] sm:$0x7] }
  0x1b   : > { %v192_v2 = vld [vmem:[%s765_s30 + $0x4] sm:$0x7]  ;;  %v210_v3 = vrot.slane %v201_v0, 5  ;;  %v194_v5 = vld [vmem:[%s765_s30 + $0xc] sm:$0x7] }
  0x1c   : > { %196 = vst.msk [vmem:[#allocation2] sm:$0x7] %vm195_vm0, %v191_v1  ;;  %197 = vst.msk [vmem:[#allocation2 + $0xc] sm:$0x7] %vm195_vm0, %v192_v2  ;;  %v200_v6 = vld [vmem:[%s765_s30] sm:$0x7] }
  0x1d   : > { %198 = vst.msk [vmem:[#allocation2 + $0x18] sm:$0x7] %vm195_vm0, %v193_v4  ;;  %199 = vst.msk [vmem:[#allocation2 + $0x24] sm:$0x7] %vm195_vm0, %v194_v5  ;;  %v202_v7 = vld [vmem:[%s765_s30 + $0x8] sm:$0x7]  ;;  %220 = vrot.lane.b32.xlu1 %v210_v3, %s677_s4 }
  0x1e   : > { %v211_v8 = vrot.slane %v210_v3, 4  ;;  %v208_v9 = vrot.slane %v200_v6, 5  ;;  %v203_v10 = vld [vmem:[%s765_s30 + $0xc] sm:$0x7]  ;;  %v212_v11 = vrot.slane %v202_v7, 5 }
  0x1f   : > { %v214_v13 = vrot.slane %v203_v10, 5  ;;  %v250_v14 = vld [vmem:[%s765_s30] sm:$0x7]  ;;  %v251_v18 = vld [vmem:[%s765_s30 + $0x4] sm:$0x7] }
  0x20   : > { %216 = vrot.lane.b32.xlu0 %v208_v9, %s677_s4  ;;  %v213_v12 = vrot.slane %v212_v11, 4  ;;  %v209_v15 = vrot.slane %v208_v9, 4  ;;  %v258_v17 = vrot.slane %v250_v14, 6  ;;  %v260_v20 = vrot.slane %v251_v18, 6  ;;  %v252_v21 = vld [vmem:[%s765_s30 + $0x8] sm:$0x7] }
  0x21   : > { %222 = vrot.lane.b32.xlu1 %v211_v8, %s677_s4  ;;  %v215_v16 = vrot.slane %v214_v13, 4  ;;  %v262_v23 = vrot.slane %v252_v21, 6  ;;  %v253_v24 = vld [vmem:[%s765_s30 + $0xc] sm:$0x7] }
  0x22   : > { %v259_v19 = vrot.slane %v258_v17, 4  ;;  %v261_v22 = vrot.slane %v260_v20, 4  ;;  %v264_v26 = vrot.slane %v253_v24, 6 }
  0x23   : > { %v263_v25 = vrot.slane %v262_v23, 4 }
  0x24   : > { %224 = vrot.lane.b32.xlu0 %v212_v11, %s677_s4  ;;  %v265_v27 = vrot.slane %v264_v26, 4 }
  0x25   : > { %226 = vrot.lane.b32.xlu1 %v213_v12, %s677_s4 }
  0x28   : > { %218 = vrot.lane.b32.xlu0 %v209_v15, %s677_s4 }
  0x29   : > { %230 = vrot.lane.b32.xlu1 %v215_v16, %s677_s4 }
  0x2c   : > { %228 = vrot.lane.b32.xlu0 %v214_v13, %s677_s4 }
  0x2d   : > { %268 = vrot.lane.b32.xlu1 %v259_v19, %s678_s6 }
  0x30   : > { %266 = vrot.lane.b32.xlu0 %v258_v17, %s678_s6 }
  0x31   : > { %272 = vrot.lane.b32.xlu1 %v261_v22, %s678_s6 }
  0x34   : > { %270 = vrot.lane.b32.xlu0 %v260_v20, %s678_s6 }
  0x35   : > { %276 = vrot.lane.b32.xlu1 %v263_v25, %s678_s6 }
  0x38   : > { %274 = vrot.lane.b32.xlu0 %v262_v23, %s678_s6 }
  0x39   : > { %280 = vrot.lane.b32.xlu1 %v265_v27, %s678_s6 }
  0x3c   : > { %278 = vrot.lane.b32.xlu0 %v264_v26, %s678_s6 }
  0x8f   : > { %v221_v28 = vpop.permute.xlu1 %220 }
  0x90   : > { %244 = vst.msk [vmem:[#allocation2 + $0xc] sm:$0x8] %vm240_vm1, %v221_v28 }
  0x92   : > { %v217_v29 = vpop.permute.xlu0 %216 }
  0x93   : > { %241 = vst.msk [vmem:[#allocation2] sm:$0x8] %vm240_vm1, %v217_v29  ;;  %v223_v30 = vpop.permute.xlu1 %222 }
  0x94   : > { %245 = vst.msk [vmem:[#allocation2 + $0x10] sm:$0x3] %vm242_vm2, %v223_v30 }
  0x96   : > { %v225_v31 = vpop.permute.xlu0 %224 }
  0x97   : > { %246 = vst.msk [vmem:[#allocation2 + $0x18] sm:$0x8] %vm240_vm1, %v225_v31  ;;  %v227_v32 = vpop.permute.xlu1 %226 }
  0x98   : > { %247 = vst.msk [vmem:[#allocation2 + $0x1c] sm:$0x3] %vm242_vm2, %v227_v32 }
  0x9a   : > { %v219_v33 = vpop.permute.xlu0 %218 }
  0x9b   : > { %243 = vst.msk [vmem:[#allocation2 + $0x4] sm:$0x3] %vm242_vm2, %v219_v33  ;;  %v231_v34 = vpop.permute.xlu1 %230 }
  0x9c   : > { %249 = vst.msk [vmem:[#allocation2 + $0x28] sm:$0x3] %vm242_vm2, %v231_v34 }
  0x9e   : > { %v229_v35 = vpop.permute.xlu0 %228 }
  0x9f   : > { %248 = vst.msk [vmem:[#allocation2 + $0x24] sm:$0x8] %vm240_vm1, %v229_v35  ;;  %v269_v36 = vpop.permute.xlu1 %268 }
  0xa0   : > { %293 = vst.msk [vmem:[#allocation2 + $0x8] sm:$0x1] %vm292_vm3, %v269_v36 }
  0xa2   : > { %v267_v37 = vpop.permute.xlu0 %266 }
  0xa3   : > { %291 = vst.msk [vmem:[#allocation2 + $0x4] sm:$0xc] %vm290_vm4, %v267_v37  ;;  %v273_v38 = vpop.permute.xlu1 %272 }
  0xa4   : > { %295 = vst.msk [vmem:[#allocation2 + $0x14] sm:$0x1] %vm292_vm3, %v273_v38 }
  0xa6   : > { %v271_v39 = vpop.permute.xlu0 %270 }
  0xa7   : > { %294 = vst.msk [vmem:[#allocation2 + $0x10] sm:$0xc] %vm290_vm4, %v271_v39  ;;  %v277_v40 = vpop.permute.xlu1 %276 }
  0xa8   : > { %297 = vst.msk [vmem:[#allocation2 + $0x20] sm:$0x1] %vm292_vm3, %v277_v40 }
  0xaa   : > { %v275_v41 = vpop.permute.xlu0 %274 }
  0xab   : > { %296 = vst.msk [vmem:[#allocation2 + $0x1c] sm:$0xc] %vm290_vm4, %v275_v41  ;;  %v281_v42 = vpop.permute.xlu1 %280 }
  0xac   : > { %299 = vst.msk [vmem:[#allocation2 + $0x2c] sm:$0x1] %vm292_vm3, %v281_v42 }
  0xae   : > { %v279_v43 = vpop.permute.xlu0 %278 }
  0xaf   : > { %298 = vst.msk [vmem:[#allocation2 + $0x28] sm:$0xc] %vm290_vm4, %v279_v43 }
  0xb0 LB: >> { %v679_v44 = vmov 0.0   ;;  %vm680_vm5 = vmmov 0   ;;  %s503_s10 = smul.u32 12, %s675_s9  ;;  %v681_v45 = vmov 0   ;;  %s493_s11 = sshll.u32 %s675_s9, 2  ;;  %vm336_vm6 = vcmask 1040384   ;;  %s675_s9 = sphi %s793_s9, %s305_s9  }
  0xb1   : >> { %508 = vmatprep.subr.bf16.mxu0 %v679_v44  ;;  %512 = vmatprep.mubr.msk.bf16.mxu0 %vm680_vm5, %v679_v44  ;;  %s316_s21 = scalar_lea.vmem %s872_s2, %s493_s11  ;;  %s491_s26 = sshll.u32 %s675_s9, 1  ;;  %vm332_vm7 = vcmask 146432   ;;  %vm381_vm8 = vcmask 101376  }
  0xb2   : >> { %586 = vset.pattern.permute.xlu0 %v681_v45  ;;  %s311_s23 = scalar_lea.vmem [#allocation2], %s503_s10  ;;  %v317_v48 = vld [vmem:[%s316_s21] sm:$0xf]  ;;  %s307_s29 = scalar_lea.vmem %s871_s1, %s491_s26 }
  0xb3   : >> { %320 = vperm.xlu0 %586, %v317_v48   ;;  %v308_v50 = vld [vmem:[%s307_s29] sm:$0x3]  ;;  %s380_s30 = scalar_lea.vmem %s184_s8, %s493_s11 [#allocation3]  ;;  %s305_s9 = sadd.s32 1, %s675_s9  }
  0xb4   : >> { %p302_p12 = scmp.ge.s32.totalorder %s305_s9, 4  }
  0xb5   : > { %s504_s4 = sshll.u32 (%p302_p12), %s663_s15, 8  ;;  %s398_s18 = sshll.u32 (%p302_p12), %s184_s8, 4  ;;  %s820_s18 = int_to_ptr.vmem [resolvable:$true] %s398_s18 }
  0xb6   : >> { %v587_v46 = vld [vmem:[%s311_s23] sm:$0xff]   ;;  %v588_v47 = vld [vmem:[%s311_s23 + $0x8] ss:$0 sps:$4 sm:$0x11]   ;;  %s816_s11 = scalar_lea.hbm (%p302_p12), %s873_s3, %s504_s4  ;;  %s824_s9 = scalar_lea.sflag (%p302_p12), [#allocation4], %s182_s5 }
  0xb7   : >> { %509 = vmatpush3.bf16.msra.mxu0 %v587_v46  ;;  %v338_v49 = vsel %vm336_vm6, %v588_v47, 0  ;;  %s589_s19 = scalar_lea.vmem (%p302_p12), %s820_s18, 256  ;;  %s682_s15 = smov (%p302_p12), [#allocation3]  }
  0xb8   : >> { %510 = vmatprep.subr.bf16.mxu0 %v679_v44  ;;  %p590_p13 = scmp.ne.s32.totalorder (%p302_p12), %s820_s18, %s589_s19  ;;  %s593_s21 = sshll.u32 (%p302_p12), %s682_s15, 4  ;;  %s594_s21 = int_to_ptr.vmem [resolvable:$false] %s593_s21 }
  0xb9   : > { %s595_s23 = scalar_lea.vmem (%p302_p12), %s594_s21, 512  ;;  %p596_p2 = scmp.lt.s32.totalorder (%p302_p12), %s820_s18, %s594_s21 }
  0xba   : > { %p591_p0 = pnand (%p302_p12), %p590_p13, %p745_p4  ;;  %p597_p3 = scmp.lt.s32.totalorder (%p302_p12), %s595_s23, %s589_s19 }
  0xbb   : >> { %511 = vmatpush3.bf16.msra.mxu0 %v338_v49 }
  0xbc   : > { %p592_p1 = pneg (%p302_p12), %p591_p0  ;;  %p598_p5 = por (%p302_p12), %p597_p3, %p596_p2 }
  0xbe   : >> { %513 = vmatmul.mubr.msk.bf16.vlgmr.msra.gmra.mrb[0].mxu0 %vm332_vm7, %v308_v50  ;;  %p599_p6 = pnand (%p302_p12), %p598_p5, %p592_p1 }
 0x132   : >> { %v321_v51 = vpop.permute.xlu0 %320 }
 0x18e   : > { %304 = sbr.rel (!%p302_p12) target bundleno = 176 (0xb0), region = 78 }
 0x191   : >> { %v374_v52 = vpop.f32.mrb[0].mxu0 }
 0x192   : >> { %v375_v53 = vadd.f32 %v374_v52, %v321_v51  ;;  %v514_v54 = vpop.f32.mrb[1].mxu0 }
 0x193   : >> { %v377_v55 = vpop.f32.mrb[2].mxu0 }
 0x194   : >> { %382 = vst.msk [vmem:[%s380_s30] sm:$0xf] %vm381_vm8, %v375_v53  ;;  %v515_v56 = vpop.f32.mrb[3].mxu0 }
 0x195   : > { %602 = shalt.err (!%p599_p6)
}
 0x196   : > { %s603_s5 = scalar_lea.hbm %s816_s11, 256  ;;  %s607_s26 = scalar_lea.hbm %s873_s3, 512 }
 0x197   : > { %p604_p7 = scmp.ne.s32.totalorder %s816_s11, %s603_s5  ;;  %p608_p11 = scmp.lt.u32.totalorder %s816_s11, %s873_s3 }
 0x198   : > { %p609_p12 = scmp.lt.u32.totalorder %s607_s26, %s603_s5  ;;  %p611_p0 = scmp.lt.u32.totalorder %s603_s5, %s816_s11 }
 0x199   : > { %p605_p9 = pnand %p604_p7, %p745_p4 }
 0x19a   : > { %p610_p13 = por %p609_p12, %p608_p11 }
 0x19b   : > { %p606_p10 = pneg %p605_p9 }
 0x19c   : > { %p612_p1 = por %p611_p0, %p610_p13 }
 0x19e   : > { %p613_p2 = pnand %p612_p1, %p606_p10 }
 0x1a0   : > { %616 = shalt.err (!%p613_p2)
}
 0x1a1   : > { %s683_s29 = smov 64   ;;  %s684_s30 = smov 4  }
 0x1a2   : > { %516 = dma.vmem_to_hbm [thread:$0]  (%p745_p4), %s820_s18, 256, %s816_s11, %s824_s9, %s683_s29, %s683_s29, %s684_s30  }
 0x1a3 PF: > { %p522_p3 = scmp.ge.s32.totalorder %s671_s17, 2  ;;  %s413_s4 = sand.u32 1, %s651_s12  }
 0x1a4   : > { %s414_s6 = scalar_lea.sflag [#allocation4], %s413_s4 }
 0x1a5   : > { %p519_p5 = pnand %p522_p3, %p752_p8 }
 0x1a7   : > { %646 = dma.done.wait (!%p519_p5), %s414_s6, 256  }
 0x1a8   : > { %648 = vsyncadd (!%p519_p5), %s414_s6, 4294967040  ;;  %s16_s17 = sadd.s32 1, %s671_s17   ;;  %s876_s12 = smov %s655_s13 }
 0x1a9   : > { %p13_p6 = scmp.ge.s32.totalorder %s16_s17, 4   ;;  %s877_s13 = smov %s659_s14 }
 0x1aa   : > { %s878_s14 = smov %s758_s25  ;;  %s879_s15 = smov %s667_s16 }
 0x1ab   : > { %s880_s16 = smov %s882_s20  ;;  %15 = sbr.rel (!%p13_p6) target bundleno = 4 (0x4), region = 89 }
 0x1b2   :  { %419 = vsyncpa [#allocation4], 1 }
 0x1b3   :  { %421 = vsyncpa [#allocation4 + $0x1], 1 }

</bundles_post_ra>
